<compile_context>
chip_gen: v6e
topology: v6e:2x2x1
jax: 0.10.0
libtpu: 0.0.40
codegen_flags: <defaults>
</compile_context>

<pallas_src>
import functools
import math

import jax
import jax.numpy as jnp
from jax.experimental import pallas as pl
from jax.experimental.pallas import tpu as pltpu


# ---------------------------------------------------------------------------
# Small rotation / fold helpers (VPU + XLU only; nothing touches the MXU).
# ---------------------------------------------------------------------------
def _lane_roll(x, shift):
    """Circular roll along the last (lane) axis: result[..., i] = x[..., (i - shift) % n].

    Equivalent to pltpu.roll(x, shift, axis=-1); written with static slices +
    concat so the rotation direction is explicit.  Lowers to lane rotations."""
    n = x.shape[-1]
    shift = shift % n
    if shift == 0:
        return x
    return jnp.concatenate([x[..., n - shift:], x[..., :n - shift]], axis=-1)


def _row_roll(x, shift):
    """Circular roll along the first (sublane) axis."""
    n = x.shape[0]
    shift = shift % n
    if shift == 0:
        return x
    return jnp.concatenate([x[n - shift:, :], x[:n - shift, :]], axis=0)


def _fold_halves(x, out_width, op):
    """Fold the lane axis in halves with `op` until it is `out_width` wide."""
    cur = x
    while cur.shape[-1] > out_width:
        half = cur.shape[-1] // 2
        cur = op(cur[..., :half], cur[..., half:])
    return cur


# ---------------------------------------------------------------------------
# Single fused kernel (no grid): all heads + all batches + fuse stage.
# ---------------------------------------------------------------------------
def _mha_fused_kernel(xres_ref, xq_ref, xkv_ref, wbig_ref, wsmall_ref, bias_ref,
                      o_ref, *, n_heads, d_head, seq, batch, eps):
    f32 = jnp.float32
    L = seq                       # attention length (= H*W = BN channels)  = 4
    B = batch                     # batch                                    = 2
    dh2 = 2 * d_head              # fc1 width per head                       = 8
    dim = n_heads * d_head        # d_model                                  = 32
    w_att = n_heads * dh2         # lanes per key position                   = 64
    wide = L * w_att              # attention slab width                     = 256
    rows = B * L                  # sublanes                                 = 8
    inv_scale = 1.0 / math.sqrt(2.0 * d_head)

    # ---- fc1 of every head: two independent single-pass bf16 MXU matmuls ----
    # a_q[(b,i), (j,h,e)] = q_h[b,i,e]  (query side; constant over j)
    # qs [(b,i), (j,h,e)] = q_h[b,j,e]  (key/value side; constant over i --
    #                                    the j-broadcast was done by the wrapper)
    w_a = wbig_ref[0:dim, :]                               # (32, 256) bf16
    w_b = wbig_ref[dim:dim + L * dim, :]                   # (128, 256) bf16
    b1 = bias_ref[0:1, :]                                  # (1, 256) f32
    a_q = jnp.dot(xq_ref[...], w_a, preferred_element_type=f32) + b1     # (8, 256)
    qs = jnp.dot(xkv_ref[...], w_b, preferred_element_type=f32) + b1     # (8, 256)

    # ---- attention scores: q . relu(q) summed over e -- VPU + lane rolls only
    prod = a_q * jnp.maximum(qs, 0.0)                      # (8, 256)
    lane = jax.lax.broadcasted_iota(jnp.int32, (rows, wide), 1)
    s = prod
    o = 1
    while o < dh2:          # XOR butterfly: per-(j, h) sum, broadcast over the e lanes
        s = s + jnp.where((lane & o) != 0, _lane_roll(s, o), _lane_roll(s, -o))
        o *= 2
    s = s * inv_scale       # s[(b,i), (j,h,*)] = score[b, i, j, h]

    # ---- softmax over the L key positions (64-lane periodic blocks) ----
    m = s
    sh = wide // 2
    while sh >= w_att:      # running max over j, broadcast to every lane (no selects needed)
        m = jnp.maximum(m, _lane_roll(m, sh))
        sh //= 2
    es = jnp.exp(s - m)                                    # one exp pass on 2 vregs
    num = _fold_halves(es * qs, w_att, jnp.add)            # sum_j exp * value   (8, 64)
    den = _fold_halves(es, w_att, jnp.add)                 # sum_j exp           (8, 64)
    f = num / den                                          # exact division (bf16-safe numerics)

    # ---- per-head fc2 (block diagonal == free concat) + relu + residual ----
    w2 = wsmall_ref[0:w_att, :]                            # (64, 32) bf16
    b2 = bias_ref[1:2, 0:dim]                              # (1, 32)
    heads = jnp.dot(f.astype(jnp.bfloat16), w2, preferred_element_type=f32) + b2
    feat = xres_ref[...] + jnp.maximum(heads, 0.0)         # (8, 32)

    # ---- BatchNorm1d(L): training-mode batch stats over (batch, dim) ----
    # rows (b, l) and (b', l) share channel l -> fold with a sublane row roll,
    # no in-kernel reshape (avoids a relayout on the critical path).
    inv_n = 1.0 / (B * dim)

    def batchnorm(t):
        tsum = t
        for b in range(1, B):
            tsum = tsum + _row_roll(t, b * L)
        mean = jnp.sum(tsum, axis=1, keepdims=True) * inv_n
        d = t - mean
        d2 = d * d
        d2sum = d2
        for b in range(1, B):
            d2sum = d2sum + _row_roll(d2, b * L)
        var = jnp.sum(d2sum, axis=1, keepdims=True) * inv_n
        return d * jax.lax.rsqrt(var + eps)

    feat = batchnorm(feat)
    wfc = wsmall_ref[w_att:w_att + dim, :]                 # (32, 32) bf16
    bfc = bias_ref[2:3, 0:dim]                             # (1, 32)
    h = jnp.dot(feat.astype(jnp.bfloat16), wfc, preferred_element_type=f32) + bfc
    # Output is a single (8, 32) vreg -> exactly one masked store; reshaping to a
    # lane-dense (2, 128) in-kernel would cost a relayout larger than the masked
    # vst it removes, so the (8, 32) layout is kept.
    o_ref[...] = batchnorm(feat + jnp.maximum(h, 0.0))


# ---------------------------------------------------------------------------
# Wrapper: layout plumbing + packed block-diagonal weights, then ONE pallas_call.
# ---------------------------------------------------------------------------
def multi_head_attention(x, params, n_heads=8):
    B, dim, H, W = x.shape
    L = H * W
    assert dim % n_heads == 0
    d_head = dim // n_heads
    dh2 = 2 * d_head
    # BatchNorm1d(num_features=4) in the module forces H*W == 4; the lane-block
    # softmax folds additionally rely on L and 2*d_head being powers of two.
    assert L == 4 and (dh2 & (dh2 - 1)) == 0
    bf16 = jnp.bfloat16
    wide = L * n_heads * dh2

    # ---- layout plumbing (plain XLA, free relative to the kernel) ----
    x_seq = jnp.transpose(x, (0, 2, 3, 1)).reshape(B, L, dim)          # (B, L, dim)
    x_heads = x_seq.reshape(n_heads, B, L, d_head)                     # torch's raw reshape
    # query-side slab: rows = (batch, pos), cols = (head, d_head)
    x_perm = jnp.transpose(x_heads, (1, 2, 0, 3)).reshape(B * L, dim)
    x_flat = x_seq.reshape(B * L, dim)                                 # residual operand (f32)
    # key/value-side slab: every row (b, i) carries its batch's full (L, dim)
    # block, so the per-key-position row broadcast costs nothing in the kernel.
    x_kv = jnp.broadcast_to(x_perm.reshape(B, 1, L * dim),
                            (B, L, L * dim)).reshape(B * L, L * dim)

    # ---- block-diagonal weights: all heads (and key positions) per matmul ----
    eye = jnp.eye(n_heads, dtype=x.dtype)
    w1_bd = (eye[:, None, :, None] *
             params["w1"][:, :, None, :]).reshape(dim, n_heads * dh2)          # (32, 64)
    w2_bd = (eye[:, None, :, None] *
             params["w2"][:, :, None, :]).reshape(n_heads * dh2, dim)          # (64, 32)
    w_a = jnp.tile(w1_bd, (1, L))                                              # (32, 256)
    w_b = jnp.kron(jnp.eye(L, dtype=x.dtype), w1_bd)                           # (128, 256)
    w_big = jnp.concatenate([w_a, w_b], axis=0).astype(bf16)                   # (160, 256)
    w_small = jnp.concatenate([w2_bd, params["w_fc"]], axis=0).astype(bf16)    # (96, 32)

    def pad_lanes(v):
        return jnp.pad(v, ((0, 0), (0, wide - v.shape[1])))
    biases = jnp.concatenate(
        [jnp.tile(params["b1"].reshape(1, n_heads * dh2), (1, L)),
         pad_lanes(params["b2"].reshape(1, dim)),
         pad_lanes(params["b_fc"].reshape(1, dim))], axis=0)                   # (3, 256) f32

    kernel = functools.partial(_mha_fused_kernel, n_heads=n_heads, d_head=d_head,
                               seq=L, batch=B, eps=1e-5)
    vmem = pl.BlockSpec(memory_space=pltpu.MemorySpace.VMEM)
    # Grid-less single call: the whole problem is one vreg-scale latency chain.
    # A batch grid axis (for v7x's second TensorCore) is not applicable here:
    # BatchNorm couples the batch elements and B == 2 anyway.
    out_flat = pl.pallas_call(
        kernel,
        out_shape=jax.ShapeDtypeStruct((B * L, dim), jnp.float32),
        in_specs=[vmem] * 6,
        out_specs=vmem,
    )(x_flat, x_perm.astype(bf16), x_kv.astype(bf16), w_big, w_small, biases)

    # TODO(synk): the module's `print('hello')` side effect and the BatchNorm
    # running-statistics buffer updates are intentionally omitted (they do not
    # affect the returned tensor in training mode).
    return out_flat.reshape(B, L, dim)


# ---------------------------------------------------------------------------
# Pure-JAX reference.  mxu_bf16=True rounds every matmul operand to bf16 first
# (f32 accumulation), mirroring the kernel's MXU precision choice.
# ---------------------------------------------------------------------------
def reference(x, params, n_heads=8, mxu_bf16=False):
    B, dim, H, W = x.shape
    d_head = dim // n_heads
    cast = ((lambda a: a.astype(jnp.bfloat16).astype(jnp.float32))
            if mxu_bf16 else (lambda a: a))
    x_seq = jnp.transpose(x, (0, 2, 3, 1)).reshape(B, H * W, dim)
    xh = x_seq.reshape(n_heads, B, H * W, d_head)
    scale = math.sqrt(2 * d_head)
    outs = []
    for h in range(n_heads):
        q = cast(xh[h]) @ cast(params["w1"][h]) + params["b1"][h]
        k = jax.nn.relu(q)
        s = jnp.einsum("bld,bmd->blm", q, k) / scale
        p = jax.nn.softmax(s, axis=-1)
        f = jnp.einsum("blm,bmd->bld", p, q)
        outs.append(jax.nn.relu(cast(f) @ cast(params["w2"][h]) + params["b2"][h]))
    feature = x_seq + jnp.concatenate(outs, axis=-1)

    def bn(t):
        mean = jnp.mean(t, axis=(0, 2), keepdims=True)
        var = jnp.mean((t - mean) ** 2, axis=(0, 2), keepdims=True)
        return (t - mean) / jnp.sqrt(var + 1e-5)

    feature = bn(feature)
    out = jax.nn.relu(jnp.einsum("bld,de->ble", cast(feature), cast(params["w_fc"]))
                      + params["b_fc"])
    return bn(feature + out)


if __name__ == "__main__":
    # H*W must equal 4 because the module uses BatchNorm1d(num_features=4).
    B, d_model, H, W = 2, 32, 2, 2
    n_heads = 8
    d_head = d_model // n_heads

    key = jax.random.PRNGKey(0)
    k = jax.random.split(key, 7)
    b1_bound = 1.0 / math.sqrt(d_head)
    b2_bound = 1.0 / math.sqrt(2 * d_head)
    fc_bound = 1.0 / math.sqrt(d_model)
    # Weights stored pre-transposed for x @ W; per-head weights stacked on axis 0.
    params = {
        "w1": jax.random.uniform(k[0], (n_heads, d_head, 2 * d_head),
                                 jnp.float32, -b1_bound, b1_bound),
        "b1": jax.random.uniform(k[1], (n_heads, 1, 2 * d_head),
                                 jnp.float32, -b1_bound, b1_bound),
        "w2": jax.random.uniform(k[2], (n_heads, 2 * d_head, d_head),
                                 jnp.float32, -b2_bound, b2_bound),
        "b2": jax.random.uniform(k[3], (n_heads, 1, d_head),
                                 jnp.float32, -b2_bound, b2_bound),
        "w_fc": jax.random.uniform(k[4], (d_model, d_model),
                                   jnp.float32, -fc_bound, fc_bound),
        "b_fc": jax.random.uniform(k[5], (1, d_model),
                                   jnp.float32, -fc_bound, fc_bound),
    }
    x = jax.random.normal(k[6], (B, d_model, H, W), jnp.float32)

    mha = jax.jit(functools.partial(multi_head_attention, n_heads=n_heads))
    out = jax.block_until_ready(mha(x, params))
    assert out.shape == (B, H * W, d_model), out.shape

    with jax.default_matmul_precision("float32"):
        ref_f32 = reference(x, params, n_heads=n_heads, mxu_bf16=False)
        ref_bf16 = reference(x, params, n_heads=n_heads, mxu_bf16=True)

    # Strong check: identical math at the kernel's (bf16 operand) MXU precision.
    err_matched = float(jnp.max(jnp.abs(out - ref_bf16)))
    assert jnp.allclose(out, ref_bf16, atol=2e-3, rtol=2e-3), err_matched
    # Semantics check vs the full-f32 reference; the remaining gap is purely the
    # bf16 rounding of MXU operands requested by the performance review.
    err_f32 = float(jnp.max(jnp.abs(out - ref_f32)))
    assert jnp.allclose(out, ref_f32, atol=3e-2, rtol=3e-2), err_f32
    print("KERNEL_OK")
</pallas_src>

<mosaic_0001>
module attributes {stable_mosaic.version = 11 : i64} {
  func.func @_mha_fused_kernel(%arg0: memref<8x32xf32, #tpu.memory_space<vmem>>, %arg1: memref<8x32xbf16, #tpu.memory_space<vmem>>, %arg2: memref<8x128xbf16, #tpu.memory_space<vmem>>, %arg3: memref<160x256xbf16, #tpu.memory_space<vmem>>, %arg4: memref<96x32xbf16, #tpu.memory_space<vmem>>, %arg5: memref<3x256xf32, #tpu.memory_space<vmem>>, %arg6: memref<8x32xf32, #tpu.memory_space<vmem>>) attributes {dimension_semantics = [], scalar_prefetch = 0 : i64, scratch_operands = 0 : i64, tpu.core_type = #tpu.core_type<tc>} {
    %c0 = arith.constant 0 : index
    %c0_0 = arith.constant 0 : index
    %0 = vector.load %arg3[%c0, %c0_0] : memref<160x256xbf16, #tpu.memory_space<vmem>>, vector<32x256xbf16>
    %c32 = arith.constant 32 : index
    %c0_1 = arith.constant 0 : index
    %1 = vector.load %arg3[%c32, %c0_1] : memref<160x256xbf16, #tpu.memory_space<vmem>>, vector<128x256xbf16>
    %c0_2 = arith.constant 0 : index
    %c0_3 = arith.constant 0 : index
    %2 = vector.load %arg5[%c0_2, %c0_3] : memref<3x256xf32, #tpu.memory_space<vmem>>, vector<1x256xf32>
    %c0_4 = arith.constant 0 : index
    %c0_5 = arith.constant 0 : index
    %3 = vector.load %arg1[%c0_4, %c0_5] : memref<8x32xbf16, #tpu.memory_space<vmem>>, vector<8x32xbf16>
    %cst = arith.constant dense<0.000000e+00> : vector<8x256xf32>
    %4 = tpu.matmul %3, %0, %cst {dimension_numbers = #tpu.dot_dimension_numbers<[1], [0], [0], [1], [0, 0, 1, 1], [], []>} : vector<8x32xbf16>, vector<32x256xbf16>, vector<8x256xf32> -> vector<8x256xf32>
    %5 = vector.broadcast %2 : vector<1x256xf32> to vector<8x256xf32>
    %6 = arith.addf %4, %5 : vector<8x256xf32>
    %c0_6 = arith.constant 0 : index
    %c0_7 = arith.constant 0 : index
    %7 = vector.load %arg2[%c0_6, %c0_7] : memref<8x128xbf16, #tpu.memory_space<vmem>>, vector<8x128xbf16>
    %cst_8 = arith.constant dense<0.000000e+00> : vector<8x256xf32>
    %8 = tpu.matmul %7, %1, %cst_8 {dimension_numbers = #tpu.dot_dimension_numbers<[1], [0], [0], [1], [0, 0, 1, 1], [], []>} : vector<8x128xbf16>, vector<128x256xbf16>, vector<8x256xf32> -> vector<8x256xf32>
    %9 = vector.broadcast %2 : vector<1x256xf32> to vector<8x256xf32>
    %10 = arith.addf %8, %9 : vector<8x256xf32>
    %cst_9 = arith.constant 0.000000e+00 : f32
    %11 = vector.broadcast %cst_9 : f32 to vector<8x256xf32>
    %12 = arith.maximumf %10, %11 : vector<8x256xf32>
    %13 = arith.mulf %6, %12 : vector<8x256xf32>
    %14 = tpu.iota {dimensions = array<i32: 1>} : vector<8x256xi32>
    %c1_i32 = arith.constant 1 : i32
    %15 = vector.broadcast %c1_i32 : i32 to vector<8x256xi32>
    %16 = arith.andi %14, %15 : vector<8x256xi32>
    %c0_i32 = arith.constant 0 : i32
    %17 = vector.broadcast %c0_i32 : i32 to vector<8x256xi32>
    %18 = arith.cmpi ne, %16, %17 : vector<8x256xi32>
    %19 = vector.extract_strided_slice %13 {offsets = [0, 255], sizes = [8, 1], strides = [1, 1]} : vector<8x256xf32> to vector<8x1xf32>
    %20 = vector.extract_strided_slice %13 {offsets = [0, 0], sizes = [8, 255], strides = [1, 1]} : vector<8x256xf32> to vector<8x255xf32>
    %21 = tpu.concatenate %19, %20 in 1 : vector<8x1xf32>, vector<8x255xf32> -> vector<8x256xf32>
    %22 = vector.extract_strided_slice %13 {offsets = [0, 1], sizes = [8, 255], strides = [1, 1]} : vector<8x256xf32> to vector<8x255xf32>
    %23 = vector.extract_strided_slice %13 {offsets = [0, 0], sizes = [8, 1], strides = [1, 1]} : vector<8x256xf32> to vector<8x1xf32>
    %24 = tpu.concatenate %22, %23 in 1 : vector<8x255xf32>, vector<8x1xf32> -> vector<8x256xf32>
    %25 = arith.select %18, %21, %24 : vector<8x256xi1>, vector<8x256xf32>
    %26 = arith.addf %13, %25 : vector<8x256xf32>
    %c2_i32 = arith.constant 2 : i32
    %27 = vector.broadcast %c2_i32 : i32 to vector<8x256xi32>
    %28 = arith.andi %14, %27 : vector<8x256xi32>
    %c0_i32_10 = arith.constant 0 : i32
    %29 = vector.broadcast %c0_i32_10 : i32 to vector<8x256xi32>
    %30 = arith.cmpi ne, %28, %29 : vector<8x256xi32>
    %31 = vector.extract_strided_slice %26 {offsets = [0, 254], sizes = [8, 2], strides = [1, 1]} : vector<8x256xf32> to vector<8x2xf32>
    %32 = vector.extract_strided_slice %26 {offsets = [0, 0], sizes = [8, 254], strides = [1, 1]} : vector<8x256xf32> to vector<8x254xf32>
    %33 = tpu.concatenate %31, %32 in 1 : vector<8x2xf32>, vector<8x254xf32> -> vector<8x256xf32>
    %34 = vector.extract_strided_slice %26 {offsets = [0, 2], sizes = [8, 254], strides = [1, 1]} : vector<8x256xf32> to vector<8x254xf32>
    %35 = vector.extract_strided_slice %26 {offsets = [0, 0], sizes = [8, 2], strides = [1, 1]} : vector<8x256xf32> to vector<8x2xf32>
    %36 = tpu.concatenate %34, %35 in 1 : vector<8x254xf32>, vector<8x2xf32> -> vector<8x256xf32>
    %37 = arith.select %30, %33, %36 : vector<8x256xi1>, vector<8x256xf32>
    %38 = arith.addf %26, %37 : vector<8x256xf32>
    %c4_i32 = arith.constant 4 : i32
    %39 = vector.broadcast %c4_i32 : i32 to vector<8x256xi32>
    %40 = arith.andi %14, %39 : vector<8x256xi32>
    %c0_i32_11 = arith.constant 0 : i32
    %41 = vector.broadcast %c0_i32_11 : i32 to vector<8x256xi32>
    %42 = arith.cmpi ne, %40, %41 : vector<8x256xi32>
    %43 = vector.extract_strided_slice %38 {offsets = [0, 252], sizes = [8, 4], strides = [1, 1]} : vector<8x256xf32> to vector<8x4xf32>
    %44 = vector.extract_strided_slice %38 {offsets = [0, 0], sizes = [8, 252], strides = [1, 1]} : vector<8x256xf32> to vector<8x252xf32>
    %45 = tpu.concatenate %43, %44 in 1 : vector<8x4xf32>, vector<8x252xf32> -> vector<8x256xf32>
    %46 = vector.extract_strided_slice %38 {offsets = [0, 4], sizes = [8, 252], strides = [1, 1]} : vector<8x256xf32> to vector<8x252xf32>
    %47 = vector.extract_strided_slice %38 {offsets = [0, 0], sizes = [8, 4], strides = [1, 1]} : vector<8x256xf32> to vector<8x4xf32>
    %48 = tpu.concatenate %46, %47 in 1 : vector<8x252xf32>, vector<8x4xf32> -> vector<8x256xf32>
    %49 = arith.select %42, %45, %48 : vector<8x256xi1>, vector<8x256xf32>
    %50 = arith.addf %38, %49 : vector<8x256xf32>
    %cst_12 = arith.constant 0.353553385 : f32
    %51 = vector.broadcast %cst_12 : f32 to vector<8x256xf32>
    %52 = arith.mulf %50, %51 : vector<8x256xf32>
    %53 = vector.extract_strided_slice %52 {offsets = [0, 128], sizes = [8, 128], strides = [1, 1]} : vector<8x256xf32> to vector<8x128xf32>
    %54 = vector.extract_strided_slice %52 {offsets = [0, 0], sizes = [8, 128], strides = [1, 1]} : vector<8x256xf32> to vector<8x128xf32>
    %55 = tpu.concatenate %53, %54 in 1 : vector<8x128xf32>, vector<8x128xf32> -> vector<8x256xf32>
    %56 = arith.maximumf %52, %55 : vector<8x256xf32>
    %57 = vector.extract_strided_slice %56 {offsets = [0, 192], sizes = [8, 64], strides = [1, 1]} : vector<8x256xf32> to vector<8x64xf32>
    %58 = vector.extract_strided_slice %56 {offsets = [0, 0], sizes = [8, 192], strides = [1, 1]} : vector<8x256xf32> to vector<8x192xf32>
    %59 = tpu.concatenate %57, %58 in 1 : vector<8x64xf32>, vector<8x192xf32> -> vector<8x256xf32>
    %60 = arith.maximumf %56, %59 : vector<8x256xf32>
    %61 = arith.subf %52, %60 : vector<8x256xf32>
    %62 = math.exp %61 : vector<8x256xf32>
    %63 = arith.mulf %62, %10 : vector<8x256xf32>
    %64 = vector.extract_strided_slice %63 {offsets = [0, 0], sizes = [8, 128], strides = [1, 1]} : vector<8x256xf32> to vector<8x128xf32>
    %65 = vector.extract_strided_slice %63 {offsets = [0, 128], sizes = [8, 128], strides = [1, 1]} : vector<8x256xf32> to vector<8x128xf32>
    %66 = arith.addf %64, %65 : vector<8x128xf32>
    %67 = vector.extract_strided_slice %66 {offsets = [0, 0], sizes = [8, 64], strides = [1, 1]} : vector<8x128xf32> to vector<8x64xf32>
    %68 = vector.extract_strided_slice %66 {offsets = [0, 64], sizes = [8, 64], strides = [1, 1]} : vector<8x128xf32> to vector<8x64xf32>
    %69 = arith.addf %67, %68 : vector<8x64xf32>
    %70 = vector.extract_strided_slice %62 {offsets = [0, 0], sizes = [8, 128], strides = [1, 1]} : vector<8x256xf32> to vector<8x128xf32>
    %71 = vector.extract_strided_slice %62 {offsets = [0, 128], sizes = [8, 128], strides = [1, 1]} : vector<8x256xf32> to vector<8x128xf32>
    %72 = arith.addf %70, %71 : vector<8x128xf32>
    %73 = vector.extract_strided_slice %72 {offsets = [0, 0], sizes = [8, 64], strides = [1, 1]} : vector<8x128xf32> to vector<8x64xf32>
    %74 = vector.extract_strided_slice %72 {offsets = [0, 64], sizes = [8, 64], strides = [1, 1]} : vector<8x128xf32> to vector<8x64xf32>
    %75 = arith.addf %73, %74 : vector<8x64xf32>
    %76 = arith.divf %69, %75 : vector<8x64xf32>
    %c0_13 = arith.constant 0 : index
    %c0_14 = arith.constant 0 : index
    %77 = vector.load %arg4[%c0_13, %c0_14] : memref<96x32xbf16, #tpu.memory_space<vmem>>, vector<64x32xbf16>
    %c1 = arith.constant 1 : index
    %c0_15 = arith.constant 0 : index
    %78 = vector.load %arg5[%c1, %c0_15] : memref<3x256xf32, #tpu.memory_space<vmem>>, vector<1x32xf32>
    %79 = arith.truncf %76 : vector<8x64xf32> to vector<8x64xbf16>
    %cst_16 = arith.constant dense<0.000000e+00> : vector<8x32xf32>
    %80 = tpu.matmul %79, %77, %cst_16 {dimension_numbers = #tpu.dot_dimension_numbers<[1], [0], [0], [1], [0, 0, 1, 1], [], []>} : vector<8x64xbf16>, vector<64x32xbf16>, vector<8x32xf32> -> vector<8x32xf32>
    %81 = vector.broadcast %78 : vector<1x32xf32> to vector<8x32xf32>
    %82 = arith.addf %80, %81 : vector<8x32xf32>
    %c0_17 = arith.constant 0 : index
    %c0_18 = arith.constant 0 : index
    %83 = vector.load %arg0[%c0_17, %c0_18] : memref<8x32xf32, #tpu.memory_space<vmem>>, vector<8x32xf32>
    %cst_19 = arith.constant 0.000000e+00 : f32
    %84 = vector.broadcast %cst_19 : f32 to vector<8x32xf32>
    %85 = arith.maximumf %82, %84 : vector<8x32xf32>
    %86 = arith.addf %83, %85 : vector<8x32xf32>
    %87 = vector.extract_strided_slice %86 {offsets = [4, 0], sizes = [4, 32], strides = [1, 1]} : vector<8x32xf32> to vector<4x32xf32>
    %88 = vector.extract_strided_slice %86 {offsets = [0, 0], sizes = [4, 32], strides = [1, 1]} : vector<8x32xf32> to vector<4x32xf32>
    %89 = tpu.concatenate %87, %88 in 0 : vector<4x32xf32>, vector<4x32xf32> -> vector<8x32xf32>
    %90 = arith.addf %86, %89 : vector<8x32xf32>
    %cst_20 = arith.constant dense<0.000000e+00> : vector<8xf32>
    %91 = vector.multi_reduction <add>, %90, %cst_20 [1] : vector<8x32xf32> to vector<8xf32>
    %92 = vector.shape_cast %91 : vector<8xf32> to vector<8x1xf32>
    %cst_21 = arith.constant 1.562500e-02 : f32
    %93 = vector.broadcast %cst_21 : f32 to vector<8x1xf32>
    %94 = arith.mulf %92, %93 : vector<8x1xf32>
    %95 = vector.broadcast %94 : vector<8x1xf32> to vector<8x32xf32>
    %96 = arith.subf %86, %95 : vector<8x32xf32>
    %97 = arith.mulf %96, %96 : vector<8x32xf32>
    %98 = vector.extract_strided_slice %97 {offsets = [4, 0], sizes = [4, 32], strides = [1, 1]} : vector<8x32xf32> to vector<4x32xf32>
    %99 = vector.extract_strided_slice %97 {offsets = [0, 0], sizes = [4, 32], strides = [1, 1]} : vector<8x32xf32> to vector<4x32xf32>
    %100 = tpu.concatenate %98, %99 in 0 : vector<4x32xf32>, vector<4x32xf32> -> vector<8x32xf32>
    %101 = arith.addf %97, %100 : vector<8x32xf32>
    %cst_22 = arith.constant dense<0.000000e+00> : vector<8xf32>
    %102 = vector.multi_reduction <add>, %101, %cst_22 [1] : vector<8x32xf32> to vector<8xf32>
    %103 = vector.shape_cast %102 : vector<8xf32> to vector<8x1xf32>
    %cst_23 = arith.constant 1.562500e-02 : f32
    %104 = vector.broadcast %cst_23 : f32 to vector<8x1xf32>
    %105 = arith.mulf %103, %104 : vector<8x1xf32>
    %cst_24 = arith.constant 9.99999974E-6 : f32
    %106 = vector.broadcast %cst_24 : f32 to vector<8x1xf32>
    %107 = arith.addf %105, %106 : vector<8x1xf32>
    %108 = math.rsqrt %107 : vector<8x1xf32>
    %109 = vector.broadcast %108 : vector<8x1xf32> to vector<8x32xf32>
    %110 = arith.mulf %96, %109 : vector<8x32xf32>
    %c64 = arith.constant 64 : index
    %c0_25 = arith.constant 0 : index
    %111 = vector.load %arg4[%c64, %c0_25] : memref<96x32xbf16, #tpu.memory_space<vmem>>, vector<32x32xbf16>
    %c2 = arith.constant 2 : index
    %c0_26 = arith.constant 0 : index
    %112 = vector.load %arg5[%c2, %c0_26] : memref<3x256xf32, #tpu.memory_space<vmem>>, vector<1x32xf32>
    %113 = arith.truncf %110 : vector<8x32xf32> to vector<8x32xbf16>
    %cst_27 = arith.constant dense<0.000000e+00> : vector<8x32xf32>
    %114 = tpu.matmul %113, %111, %cst_27 {dimension_numbers = #tpu.dot_dimension_numbers<[1], [0], [0], [1], [0, 0, 1, 1], [], []>} : vector<8x32xbf16>, vector<32x32xbf16>, vector<8x32xf32> -> vector<8x32xf32>
    %115 = vector.broadcast %112 : vector<1x32xf32> to vector<8x32xf32>
    %116 = arith.addf %114, %115 : vector<8x32xf32>
    %cst_28 = arith.constant 0.000000e+00 : f32
    %117 = vector.broadcast %cst_28 : f32 to vector<8x32xf32>
    %118 = arith.maximumf %116, %117 : vector<8x32xf32>
    %119 = arith.addf %110, %118 : vector<8x32xf32>
    %120 = vector.extract_strided_slice %119 {offsets = [4, 0], sizes = [4, 32], strides = [1, 1]} : vector<8x32xf32> to vector<4x32xf32>
    %121 = vector.extract_strided_slice %119 {offsets = [0, 0], sizes = [4, 32], strides = [1, 1]} : vector<8x32xf32> to vector<4x32xf32>
    %122 = tpu.concatenate %120, %121 in 0 : vector<4x32xf32>, vector<4x32xf32> -> vector<8x32xf32>
    %123 = arith.addf %119, %122 : vector<8x32xf32>
    %cst_29 = arith.constant dense<0.000000e+00> : vector<8xf32>
    %124 = vector.multi_reduction <add>, %123, %cst_29 [1] : vector<8x32xf32> to vector<8xf32>
    %125 = vector.shape_cast %124 : vector<8xf32> to vector<8x1xf32>
    %cst_30 = arith.constant 1.562500e-02 : f32
    %126 = vector.broadcast %cst_30 : f32 to vector<8x1xf32>
    %127 = arith.mulf %125, %126 : vector<8x1xf32>
    %128 = vector.broadcast %127 : vector<8x1xf32> to vector<8x32xf32>
    %129 = arith.subf %119, %128 : vector<8x32xf32>
    %130 = arith.mulf %129, %129 : vector<8x32xf32>
    %131 = vector.extract_strided_slice %130 {offsets = [4, 0], sizes = [4, 32], strides = [1, 1]} : vector<8x32xf32> to vector<4x32xf32>
    %132 = vector.extract_strided_slice %130 {offsets = [0, 0], sizes = [4, 32], strides = [1, 1]} : vector<8x32xf32> to vector<4x32xf32>
    %133 = tpu.concatenate %131, %132 in 0 : vector<4x32xf32>, vector<4x32xf32> -> vector<8x32xf32>
    %134 = arith.addf %130, %133 : vector<8x32xf32>
    %cst_31 = arith.constant dense<0.000000e+00> : vector<8xf32>
    %135 = vector.multi_reduction <add>, %134, %cst_31 [1] : vector<8x32xf32> to vector<8xf32>
    %136 = vector.shape_cast %135 : vector<8xf32> to vector<8x1xf32>
    %cst_32 = arith.constant 1.562500e-02 : f32
    %137 = vector.broadcast %cst_32 : f32 to vector<8x1xf32>
    %138 = arith.mulf %136, %137 : vector<8x1xf32>
    %cst_33 = arith.constant 9.99999974E-6 : f32
    %139 = vector.broadcast %cst_33 : f32 to vector<8x1xf32>
    %140 = arith.addf %138, %139 : vector<8x1xf32>
    %141 = math.rsqrt %140 : vector<8x1xf32>
    %142 = vector.broadcast %141 : vector<8x1xf32> to vector<8x32xf32>
    %143 = arith.mulf %129, %142 : vector<8x32xf32>
    %c0_34 = arith.constant 0 : index
    %c0_35 = arith.constant 0 : index
    %144 = vector.load %arg6[%c0_34, %c0_35] : memref<8x32xf32, #tpu.memory_space<vmem>>, vector<8x32xf32>
    tpu.vector_store %arg6[%c0_34, %c0_35], %143 {strides = array<i32>} : memref<8x32xf32, #tpu.memory_space<vmem>>, vector<8x32xf32>,
    return
  }
}

</mosaic_0001>

<bundles_post_ra>
// kernel: tile.0
= control target key start
LH: loop header
LB: loop body
LE: loop exit
PB: predicated region body
PF: predicated region fallthrough
CT: control target
= control target key end

     0   :  { %s994_s12 = smov 3  ;;  %s996_s13 = smov 3  ;;  %vm516_vm0 = vcmask 523264   ;;  %vm708_vm1 = vcmask 1047556   ;;  %vm712_vm2 = vcmask 1048064   ;;  %s1124_s0 = inlined_call_operand.vmem [shape: bf16[32,4,64], index: 0, kind: input, shape index: {}]   ;;  %s1125_s1 = inlined_call_operand.vmem [shape: bf16[32,256], index: 1, kind: output, shape index: {}]  }
   0x1   :  { %v900_v0 = vld [vmem:[%s1124_s0 + $0x2a] sm:$0xff]   ;;  %v903_v1 = vld [vmem:[%s1124_s0 + $0x22] sm:$0xff]   ;;  %v907_v2 = vld [vmem:[%s1124_s0 + $0x1a] sm:$0xff]   ;;  %s1007_s20 = smov 3  ;;  %s1009_s21 = smov 3 }
   0x2   :  { %v146_v3 = vunpack.c.h.bf16 %v900_v0  ;;  %v162_v4 = vunpack.c.l.bf16 %v900_v0  ;;  %v194_v5 = vunpack.c.h.bf16 %v903_v1  ;;  %v915_v6 = vld [vmem:[%s1124_s0 + $0xc] sm:$0xff]   ;;  %v918_v7 = vld [vmem:[%s1124_s0 + $0x4] sm:$0xff]   ;;  %v922_v8 = vld [vmem:[%s1124_s0] ss:$52 sps:$4 sm:$0xff]   ;;  %v226_v9 = vunpack.c.l.bf16 %v903_v1  ;;  %s1011_s22 = smov 3  ;;  %s1013_s23 = smov 3 }
   0x3   :  { %v258_v10 = vunpack.c.h.bf16 %v907_v2  ;;  %v892_v11 = vld [vmem:[%s1124_s0 + $0x38] sm:$0xff]   ;;  %v386_v12 = vunpack.c.h.bf16 %v915_v6  ;;  %v402_v13 = vunpack.c.l.bf16 %v915_v6  ;;  %v434_v14 = vunpack.c.h.bf16 %v918_v7  ;;  %s1018_s26 = smov 3  ;;  %s1020_s27 = smov 3  ;;  %v898_v17 = vld [vmem:[%s1124_s0 + $0x14] ss:$30 sps:$2 sm:$0xf]  }
   0x4   :  { %149 = vst [vmem:[#allocation1 + $0xb8] ss:$8 sps:$4 sm:$0xff] %v146_v3   ;;  %165 = vst [vmem:[#allocation1 + $0xa8] ss:$8 sps:$4 sm:$0xff] %v162_v4   ;;  %v466_v15 = vunpack.c.l.bf16 %v918_v7  ;;  %v497_v16 = vunpack.c.l.bf16 %v922_v8  ;;  %s1022_s28 = smov 3  ;;  %s1024_s29 = smov 3  ;;  %v18_v18 = vunpack.c.h.bf16 %v892_v11  ;;  %v50_v20 = vunpack.c.l.bf16 %v892_v11 }
   0x5   :  { %197 = vst [vmem:[#allocation1 + $0x98] ss:$8 sps:$4 sm:$0xff] %v194_v5   ;;  %229 = vst [vmem:[#allocation1 + $0x88] ss:$8 sps:$4 sm:$0xff] %v226_v9   ;;  %s1029_s3 = smov 3  ;;  %s627_s4 = smov 3  ;;  %v82_v21 = vunpack.c.h.bf16 %v922_v8  ;;  %v114_v22 = vunpack.c.l.bf16 %v898_v17  ;;  %v290_v23 = vunpack.c.l.bf16 %v907_v2 }
   0x6   :  { %261 = vst [vmem:[#allocation1 + $0x78] ss:$8 sps:$4 sm:$0xff] %v258_v10   ;;  %389 = vst [vmem:[#allocation1 + $0x40] ss:$8 sps:$4 sm:$0xff] %v386_v12   ;;  %v911_v19 = vld [vmem:[%s1124_s0 + $0x16] sm:$0xf]  }
   0x7   :  { %405 = vst [vmem:[#allocation1 + $0x30] ss:$8 sps:$4 sm:$0xff] %v402_v13   ;;  %437 = vst [vmem:[#allocation1 + $0x20] ss:$8 sps:$4 sm:$0xff] %v434_v14   ;;  %s633_s0 = smov 3  ;;  %s639_s7 = smov 3  ;;  %v322_v24 = vunpack.c.l.bf16 %v911_v19 }
   0x8   :  { %469 = vst [vmem:[#allocation1 + $0x10] ss:$8 sps:$4 sm:$0xff] %v466_v15   ;;  %500 = vst [vmem:[#allocation1] ss:$8 sps:$4 sm:$0xff] %v497_v16   ;;  %s1034_s8 = smov 3  ;;  %s1036_s9 = smov 3 }
   0x9   :  { %21 = vst [vmem:[#allocation1 + $0xf0] ss:$8 sps:$4 sm:$0xff] %v18_v18   ;;  %53 = vst [vmem:[#allocation1 + $0xe0] ss:$8 sps:$4 sm:$0xff] %v50_v20   ;;  %s1038_s10 = smov 3  ;;  %s1040_s11 = smov 3 }
   0xa   :  { %85 = vst [vmem:[#allocation1 + $0xd0] ss:$8 sps:$4 sm:$0xff] %v82_v21   ;;  %117 = vst [vmem:[#allocation1 + $0x50] ss:$120 sps:$4 sm:$0xff] %v114_v22   ;;  %s1042_s14 = smov 3  ;;  %s597_s15 = smov 3 }
   0xb   :  { %v640_v27 = vld [vmem:[#allocation1 + $0xa8] ss:$2 sm:%s639_s7]   ;;  %293 = vst [vmem:[#allocation1 + $0x68] ss:$8 sps:$4 sm:$0xff] %v290_v23   ;;  %325 = vst [vmem:[#allocation1 + $0x58] ss:$8 sps:$4 sm:$0xff] %v322_v24  }
   0xc   :  { %v628_v25 = vld [vmem:[#allocation1 + $0x98] ss:$2 sm:%s627_s4]   ;;  %v616_v29 = vld [vmem:[#allocation1 + $0x88] ss:$2 sm:%s1024_s29]   ;;  %s603_s16 = smov 3  ;;  %s974_s17 = smov 64  }
   0xd   :  { %v634_v26 = vld [vmem:[#allocation1 + $0xa0] ss:$2 sm:%s633_s0]   ;;  %v622_v30 = vld [vmem:[#allocation1 + $0x90] ss:$2 sm:%s1029_s3]   ;;  %s651_s18 = smov 3  ;;  %s657_s19 = smov 3 }
   0xe   :  { %v610_v28 = vld [vmem:[#allocation1 + $0x80] ss:$2 sm:%s1022_s28]   ;;  %631 = vst.msk [vmem:[#allocation0 + $0x23] ss:$8 sm:$0x3] %vm516_vm0, %v628_v25   ;;  %s687_s24 = smov 3 }
   0xf   :  { %637 = vst.msk [vmem:[#allocation0 + $0x24] ss:$8 sm:$0x3] %vm516_vm0, %v634_v26   ;;  %643 = vst.msk [vmem:[#allocation0 + $0x25] ss:$8 sm:$0x3] %vm516_vm0, %v640_v27  }
  0x10   :  { %v538_v31 = vld [vmem:[#allocation1 + $0x20] ss:$2 sm:%s1011_s22]   ;;  %v550_v33 = vld [vmem:[#allocation1 + $0x30] ss:$2 sm:%s1018_s26]   ;;  %s675_s22 = smov 3  ;;  %s693_s25 = smov 3 }
  0x11   :  { %v544_v32 = vld [vmem:[#allocation1 + $0x28] ss:$2 sm:%s1013_s23]   ;;  %613 = vst.msk [vmem:[#allocation0 + $0x20] ss:$8 sm:$0x3] %vm516_vm0, %v610_v28   ;;  %s681_s23 = smov 3 }
  0x12   :  { %619 = vst.msk [vmem:[#allocation0 + $0x21] ss:$8 sm:$0x3] %vm516_vm0, %v616_v29   ;;  %625 = vst.msk [vmem:[#allocation0 + $0x22] ss:$8 sm:$0x3] %vm516_vm0, %v622_v30  }
  0x13   :  { %v515_v34 = vld [vmem:[#allocation1] ss:$2 sm:%s994_s12]   ;;  %v526_v36 = vld [vmem:[#allocation1 + $0x10] ss:$2 sm:%s1007_s20]   ;;  %s585_s12 = smov 3  ;;  %s663_s20 = smov 3 }
  0x14   :  { %v520_v35 = vld [vmem:[#allocation1 + $0x8] ss:$2 sm:%s996_s13]   ;;  %541 = vst.msk [vmem:[#allocation0 + $0x4] ss:$8 sm:$0x3] %vm516_vm0, %v538_v31   ;;  %s591_s13 = smov 3 }
  0x15   :  { %547 = vst.msk [vmem:[#allocation0 + $0x5] ss:$8 sm:$0x3] %vm516_vm0, %v544_v32   ;;  %553 = vst.msk [vmem:[#allocation0 + $0x6] ss:$8 sm:$0x3] %vm516_vm0, %v550_v33  }
  0x16   :  { %517 = vst.msk [vmem:[#allocation0] ss:$8 sm:$0x3] %vm516_vm0, %v515_v34   ;;  %523 = vst.msk [vmem:[#allocation0 + $0x1] ss:$8 sm:$0x3] %vm516_vm0, %v520_v35  }
  0x17   :  { %529 = vst.msk [vmem:[#allocation0 + $0x2] ss:$8 sm:$0x3] %vm516_vm0, %v526_v36   ;;  %v532_v37 = vld [vmem:[#allocation1 + $0x18] ss:$2 sm:%s1009_s21]   ;;  %s669_s21 = smov 3 }
  0x18   :  { %v556_v38 = vld [vmem:[#allocation1 + $0x38] ss:$2 sm:%s1020_s27]   ;;  %535 = vst.msk [vmem:[#allocation0 + $0x3] ss:$8 sm:$0x3] %vm516_vm0, %v532_v37   ;;  %s699_s26 = smov 3 }
  0x19   :  { %v646_v39 = vld [vmem:[#allocation1 + $0xb0] ss:$2 sm:%s1034_s8]   ;;  %559 = vst.msk [vmem:[#allocation0 + $0x7] ss:$8 sm:$0x3] %vm516_vm0, %v556_v38  }
  0x1a   :  { %v705_v40 = vld [vmem:[#allocation1 + $0x1] ss:$8 sm:$0xf]   ;;  %649 = vst.msk [vmem:[#allocation0 + $0x26] ss:$8 sm:$0x3] %vm516_vm0, %v646_v39  }
  0x1b   :  { %v707_v41 = vld [vmem:[#allocation1 + $0x1] ss:$8 sm:$0xf0]   ;;  %v562_v46 = vld [vmem:[#allocation1 + $0x40] ss:$2 sm:%s1036_s9]  }
  0x1c   :  { %v709_v42 = vsel %vm708_vm1, %v707_v41, %v705_v40  ;;  %v715_v43 = vld [vmem:[#allocation1 + $0x81] ss:$8 sm:$0xf]   ;;  %v568_v47 = vld [vmem:[#allocation1 + $0x48] ss:$2 sm:%s1038_s10]  }
  0x1d   :  { %v717_v44 = vld [vmem:[#allocation1 + $0x81] ss:$8 sm:$0xf0]   ;;  %v574_v48 = vld [vmem:[#allocation1 + $0x50] ss:$2 sm:%s1040_s11]  }
  0x1e   :  { %v719_v45 = vsel %vm708_vm1, %v717_v44, %v715_v43  ;;  %565 = vst.msk [vmem:[#allocation0 + $0x10] ss:$8 sm:$0x3] %vm516_vm0, %v562_v46   ;;  %571 = vst.msk [vmem:[#allocation0 + $0x11] ss:$8 sm:$0x3] %vm516_vm0, %v568_v47  }
  0x1f   :  { %v954_v49 = vpack.i.bf16 %v719_v45, %v709_v42  ;;  %577 = vst.msk [vmem:[#allocation0 + $0x12] ss:$8 sm:$0x3] %vm516_vm0, %v574_v48   ;;  %v580_v50 = vld [vmem:[#allocation1 + $0x58] ss:$2 sm:%s1042_s14]  }
  0x20   :  { %583 = vst.msk [vmem:[#allocation0 + $0x13] ss:$8 sm:$0x3] %vm516_vm0, %v580_v50   ;;  %v586_v51 = vld [vmem:[#allocation1 + $0x60] ss:$2 sm:%s585_s12]  }
  0x21   :  { %v592_v52 = vld [vmem:[#allocation1 + $0x68] ss:$2 sm:%s591_s13]   ;;  %955 = vrot.lane.b32.xlu0 %v954_v49, %s974_s17  ;;  %589 = vst.msk [vmem:[#allocation0 + $0x14] ss:$8 sm:$0x3] %vm516_vm0, %v586_v51  }
  0x22   :  { %595 = vst.msk [vmem:[#allocation0 + $0x15] ss:$8 sm:$0x3] %vm516_vm0, %v592_v52   ;;  %v598_v53 = vld [vmem:[#allocation1 + $0x70] ss:$2 sm:%s597_s15]  }
  0x23   :  { %v604_v54 = vld [vmem:[#allocation1 + $0x78] ss:$2 sm:%s603_s16]   ;;  %601 = vst.msk [vmem:[#allocation0 + $0x16] ss:$8 sm:$0x3] %vm516_vm0, %v598_v53  }
  0x24   :  { %607 = vst.msk [vmem:[#allocation0 + $0x17] ss:$8 sm:$0x3] %vm516_vm0, %v604_v54   ;;  %v652_v55 = vld [vmem:[#allocation1 + $0xb8] ss:$2 sm:%s651_s18]  }
  0x25   :  { %v658_v56 = vld [vmem:[#allocation1 + $0xc0] ss:$2 sm:%s657_s19]   ;;  %655 = vst.msk [vmem:[#allocation0 + $0x27] ss:$8 sm:$0x3] %vm516_vm0, %v652_v55  }
  0x26   :  { %661 = vst.msk [vmem:[#allocation0 + $0x30] ss:$8 sm:$0x3] %vm516_vm0, %v658_v56   ;;  %v664_v57 = vld [vmem:[#allocation1 + $0xc8] ss:$2 sm:%s663_s20]  }
  0x27   :  { %v670_v58 = vld [vmem:[#allocation1 + $0xd0] ss:$2 sm:%s669_s21]   ;;  %667 = vst.msk [vmem:[#allocation0 + $0x31] ss:$8 sm:$0x3] %vm516_vm0, %v664_v57  }
  0x28   :  { %673 = vst.msk [vmem:[#allocation0 + $0x32] ss:$8 sm:$0x3] %vm516_vm0, %v670_v58   ;;  %v676_v59 = vld [vmem:[#allocation1 + $0xd8] ss:$2 sm:%s675_s22]  }
  0x29   :  { %v682_v60 = vld [vmem:[#allocation1 + $0xe0] ss:$2 sm:%s681_s23]   ;;  %679 = vst.msk [vmem:[#allocation0 + $0x33] ss:$8 sm:$0x3] %vm516_vm0, %v676_v59  }
  0x2a   :  { %685 = vst.msk [vmem:[#allocation0 + $0x34] ss:$8 sm:$0x3] %vm516_vm0, %v682_v60   ;;  %v688_v61 = vld [vmem:[#allocation1 + $0xe8] ss:$2 sm:%s687_s24]  }
  0x2b   :  { %v748_v62 = vld [vmem:[#allocation1 + $0x41] ss:$8 sm:$0xf]   ;;  %691 = vst.msk [vmem:[#allocation0 + $0x35] ss:$8 sm:$0x3] %vm516_vm0, %v688_v61  }
  0x2c   :  { %v750_v63 = vld [vmem:[#allocation1 + $0x41] ss:$8 sm:$0xf0]   ;;  %v694_v3 = vld [vmem:[#allocation1 + $0xf0] ss:$2 sm:%s693_s25]  }
  0x2d   :  { %v759_v0 = vld [vmem:[#allocation1 + $0xc1] ss:$8 sm:$0xf]   ;;  %v752_v1 = vsel %vm708_vm1, %v750_v63, %v748_v62  ;;  %697 = vst.msk [vmem:[#allocation0 + $0x36] ss:$8 sm:$0x3] %vm516_vm0, %v694_v3  }
  0x2e   :  { %v761_v2 = vld [vmem:[#allocation1 + $0xc1] ss:$8 sm:$0xf0]   ;;  %v700_v5 = vld [vmem:[#allocation1 + $0xf8] ss:$2 sm:%s699_s26]  }
  0x2f   :  { %v763_v4 = vsel %vm708_vm1, %v761_v2, %v759_v0  ;;  %v726_v6 = vld [vmem:[#allocation1 + $0x3] ss:$8 sm:$0xf]   ;;  %703 = vst.msk [vmem:[#allocation0 + $0x37] ss:$8 sm:$0x3] %vm516_vm0, %v700_v5  }
  0x30   :  { %v964_v7 = vpack.i.bf16 %v763_v4, %v752_v1  ;;  %v728_v8 = vld [vmem:[#allocation1 + $0x3] ss:$8 sm:$0xf0]  }
  0x31   :  { %v737_v9 = vld [vmem:[#allocation1 + $0x83] ss:$8 sm:$0xf]   ;;  %v730_v10 = vsel %vm708_vm1, %v728_v8, %v726_v6 }
  0x32   :  { %v739_v11 = vld [vmem:[#allocation1 + $0x83] ss:$8 sm:$0xf0]   ;;  %965 = vrot.lane.b32.xlu1 %v964_v7, %s974_s17 }
  0x33   :  { %v770_v12 = vld [vmem:[#allocation1 + $0x43] ss:$8 sm:$0xf]   ;;  %v741_v13 = vsel %vm708_vm1, %v739_v11, %v737_v9 }
  0x34   :  { %v772_v14 = vld [vmem:[#allocation1 + $0x43] ss:$8 sm:$0xf0]   ;;  %v959_v16 = vpack.i.bf16 %v741_v13, %v730_v10 }
  0x35   :  { %v781_v15 = vld [vmem:[#allocation1 + $0xc3] ss:$8 sm:$0xf]   ;;  %v774_v17 = vsel %vm708_vm1, %v772_v14, %v770_v12 }
  0x36   :  { %v783_v18 = vld [vmem:[#allocation1 + $0xc3] ss:$8 sm:$0xf0]   ;;  %960 = vrot.lane.b32.xlu0 %v959_v16, %s974_s17 }
  0x37   :  { %v785_v19 = vsel %vm708_vm1, %v783_v18, %v781_v15 }
  0x38   :  { %v969_v20 = vpack.i.bf16 %v785_v19, %v774_v17 }
  0x3a   :  { %970 = vrot.lane.b32.xlu1 %v969_v20, %s974_s17 }
  0x93   :  { %v956_v21 = vpop.permute.xlu0 %955 }
  0x94   :  { %v958_v22 = vunpack.i.h.bf16 %v956_v21  ;;  %v957_v23 = vunpack.i.l.bf16 %v956_v21 }
  0x96   :  { %724 = vst.msk [vmem:[#allocation0 + $0x20] sm:$0xff] %vm712_vm2, %v958_v22   ;;  %713 = vst.msk [vmem:[#allocation0] sm:$0xff] %vm712_vm2, %v957_v23  }
  0x9d   :  { %v825_v33 = vld [vmem:[#allocation0 + $0x20] sm:$0xff] }
  0x9e   :  { %v796_v34 = vld [vmem:[#allocation0] sm:$0xff] }
  0xa4   :  { %v966_v24 = vpop.permute.xlu1 %965 }
  0xa5   :  { %v968_v25 = vunpack.i.h.bf16 %v966_v24  ;;  %v967_v26 = vunpack.i.l.bf16 %v966_v24 }
  0xa7   :  { %757 = vst.msk [vmem:[#allocation0 + $0x10] sm:$0xff] %vm712_vm2, %v967_v26   ;;  %768 = vst.msk [vmem:[#allocation0 + $0x30] sm:$0xff] %vm712_vm2, %v968_v25  }
  0xa8   :  { %v961_v27 = vpop.permute.xlu0 %960 }
  0xa9   :  { %v963_v28 = vunpack.i.h.bf16 %v961_v27  ;;  %v962_v29 = vunpack.i.l.bf16 %v961_v27 }
  0xab   :  { %746 = vst.msk [vmem:[#allocation0 + $0x28] sm:$0xff] %vm712_vm2, %v963_v28   ;;  %735 = vst.msk [vmem:[#allocation0 + $0x8] sm:$0xff] %vm712_vm2, %v962_v29  }
  0xac   :  { %v971_v30 = vpop.permute.xlu1 %970 }
  0xad   :  { %v973_v31 = vunpack.i.h.bf16 %v971_v30  ;;  %v972_v32 = vunpack.i.l.bf16 %v971_v30 }
  0xae   :  { %v809_v37 = vld [vmem:[#allocation0 + $0x10] sm:$0xff] }
  0xaf   :  { %779 = vst.msk [vmem:[#allocation0 + $0x18] sm:$0xff] %vm712_vm2, %v972_v32   ;;  %790 = vst.msk [vmem:[#allocation0 + $0x38] sm:$0xff] %vm712_vm2, %v973_v31   ;;  %v841_v40 = vld [vmem:[#allocation0 + $0x30] sm:$0xff] }
  0xb2   :  { %v833_v35 = vld [vmem:[#allocation0 + $0x28] sm:$0xff] }
  0xb3   :  { %v802_v36 = vld [vmem:[#allocation0 + $0x8] sm:$0xff]  ;;  %v943_v38 = vpack.c.bf16 %v833_v35, %v825_v33 }
  0xb4   :  { %v933_v39 = vpack.c.bf16 %v802_v36, %v796_v34 }
  0xb5   :  { %951 = vst [vmem:[%s1125_s1 + $0x10] sm:$0xff] %v943_v38  }
  0xb6   :  { %v817_v41 = vld [vmem:[#allocation0 + $0x18] sm:$0xff]  ;;  %934 = vst [vmem:[%s1125_s1] sm:$0xff] %v933_v39  }
  0xb7   :  { %v849_v42 = vld [vmem:[#allocation0 + $0x38] sm:$0xff]  ;;  %v938_v43 = vpack.c.bf16 %v817_v41, %v809_v37 }
  0xb8   :  { %v948_v44 = vpack.c.bf16 %v849_v42, %v841_v40 }
  0xb9   :  { %950 = vst [vmem:[%s1125_s1 + $0x8] sm:$0xff] %v938_v43  }
  0xba   :  { %952 = vst [vmem:[%s1125_s1 + $0x18] sm:$0xff] %v948_v44  }

// kernel: multi_head_attention.1
= control target key start
LH: loop header
LB: loop body
LE: loop exit
PB: predicated region body
PF: predicated region fallthrough
CT: control target
= control target key end

     0   :  { %v724_v2 = vmov 0   ;;  %vm78_vm0 = vcmask 261120   ;;  %s884_s0 = inlined_call_operand.vmem [shape: f32[8,32], index: 0, kind: input, shape index: {}]   ;;  %s885_s1 = inlined_call_operand.vmem [shape: bf16[8,32], index: 1, kind: input, shape index: {}]   ;;  %s886_s2 = inlined_call_operand.vmem [shape: bf16[8,128], index: 2, kind: input, shape index: {}]   ;;  %s887_s3 = inlined_call_operand.vmem [shape: bf16[160,256], index: 3, kind: input, shape index: {}]   ;;  %s888_s4 = inlined_call_operand.vmem [shape: bf16[96,32], index: 4, kind: input, shape index: {}]   ;;  %s889_s5 = inlined_call_operand.vmem [shape: f32[3,256], index: 5, kind: input, shape index: {}]   ;;  %s890_s6 = inlined_call_operand.hbm [shape: f32[8,32], index: 6, kind: output, shape index: {}]  }
   0x1   :  { %v656_v0 = vld [vmem:[%s887_s3 + $0x94] ss:$8 sps:$4 sm:$0xff]   ;;  %v658_v1 = vld [vmem:[%s887_s3 + $0x90] ss:$8 sps:$4 sm:$0xff]   ;;  %114 = vmatprep.mubr.bf16.mxu0 %v724_v2  ;;  %236 = vmatprep.mubr.bf16.mxu1 %v724_v2  ;;  %v659_v3 = vld [vmem:[%s887_s3 + $0x84] ss:$8 sps:$4 sm:$0xff]  }
   0x2   :  { %204 = vmatprep.subr.bf16.mxu1 %v656_v0  ;;  %v661_v4 = vld [vmem:[%s887_s3 + $0x80] ss:$8 sps:$4 sm:$0xff]   ;;  %v662_v5 = vld [vmem:[%s887_s3 + $0x74] ss:$8 sps:$4 sm:$0xff]   ;;  %v664_v6 = vld [vmem:[%s887_s3 + $0x70] ss:$8 sps:$4 sm:$0xff]  }
   0x3   :  { %205 = vmatpush1.bf16.msra.mxu1 %v658_v1  ;;  %v671_v7 = vld [vmem:[%s887_s3 + $0x14] ss:$8 sps:$4 sm:$0xff]   ;;  %v665_v8 = vld [vmem:[%s887_s3 + $0x64] ss:$8 sps:$4 sm:$0xff]   ;;  %v675_v9 = vld [vmem:[%s887_s3 + $0x10] ss:$8 sps:$4 sm:$0xff]  }
   0x4   :  { %206 = vmatprep.subr.bf16.mxu1 %v659_v3  ;;  %94 = vmatprep.subr.bf16.mxu0 %v671_v7  ;;  %v677_v10 = vld [vmem:[%s887_s3 + $0x4] ss:$8 sps:$4 sm:$0xff]   ;;  %v667_v11 = vld [vmem:[%s887_s3 + $0x60] ss:$8 sps:$4 sm:$0xff]   ;;  %v668_v13 = vld [vmem:[%s887_s3 + $0x54] ss:$8 sps:$4 sm:$0xff]  }
   0x5   :  { %95 = vmatpush1.bf16.msra.mxu0 %v675_v9  ;;  %v681_v12 = vld [vmem:[%s887_s3] ss:$8 sps:$4 sm:$0xff]   ;;  %v670_v14 = vld [vmem:[%s887_s3 + $0x50] ss:$8 sps:$4 sm:$0xff]   ;;  %v673_v15 = vld [vmem:[%s887_s3 + $0x44] ss:$8 sps:$4 sm:$0xff]  }
   0x6   :  { %96 = vmatprep.subr.bf16.mxu0 %v677_v10  ;;  %v46_v16 = vld [vmem:[%s885_s1] sm:$0xf] }
   0x7   :  { %207 = vmatpush1.bf16.msra.mxu1 %v661_v4 }
   0x8   :  { %208 = vmatprep.subr.bf16.mxu1 %v662_v5 }
   0x9   :  { %97 = vmatpush1.bf16.msra.mxu0 %v681_v12 }
   0xb   :  { %209 = vmatpush1.bf16.msra.mxu1 %v664_v6 }
   0xc   :  { %210 = vmatprep.subr.bf16.mxu1 %v665_v8  ;;  %590 = vmatmul.mubr.msk.bf16.vlgmr.msra.gmra.mxu0 %vm78_vm0, %v46_v16 }
   0xf   :  { %211 = vmatpush1.bf16.msra.mxu1 %v667_v11 }
  0x10   :  { %212 = vmatprep.subr.bf16.mxu1 %v668_v13 }
  0x11   :  { %11 = vsyncpa [#allocation3], 0  ;;  %v676_v17 = vld [vmem:[%s887_s3 + $0x40] ss:$8 sps:$4 sm:$0xff]   ;;  %v679_v18 = vld [vmem:[%s887_s3 + $0x34] ss:$8 sps:$4 sm:$0xff]   ;;  %v48_v24 = vlaneseq }
  0x12   :  { %v682_v19 = vld [vmem:[%s887_s3 + $0x30] ss:$8 sps:$4 sm:$0xff]   ;;  %v683_v20 = vld [vmem:[%s887_s3 + $0x24] ss:$8 sps:$4 sm:$0xff]   ;;  %v685_v21 = vld [vmem:[%s887_s3 + $0x20] ss:$8 sps:$4 sm:$0xff]  }
  0x13   :  { %213 = vmatpush1.bf16.msra.mxu1 %v670_v14  ;;  %v123_v22 = vld [vmem:[%s886_s2] sm:$0xf]  ;;  %v49_v27 = vshrl.u32 %v48_v24, 7  ;;  %s725_s2 = smov 127   ;;  %s726_s3 = smov 1   ;;  %v250_v46 = vand.u32 127, %v48_v24 }
  0x14   :  { %214 = vmatprep.subr.bf16.mxu1 %v673_v15  ;;  %v45_v30 = vld [vmem:[%s889_s5] ss:$4 sm:$0x3]  ;;  %vm272_vm1 = vcmask 1039360   ;;  %vm263_vm2 = vcmask 7168   ;;  %s727_s18 = smov 2  }
  0x15   :  { %v50_v29 = vsub.s32 0, %v49_v27  ;;  %v54_v31 = vsub.s32 1, %v49_v27  ;;  %v251_v47 = vadd.s32 128, %v250_v46  ;;  %v252_v49 = vand.u32 1, %v250_v46  ;;  %s728_s19 = smov 126   ;;  %s729_s20 = smov 4  }
  0x16   :  { %v282_v62 = vand.u32 2, %v250_v46  ;;  %vm293_vm5 = vcmask 15360   ;;  %vm302_vm6 = vcmask 1031168   ;;  %s730_s21 = smov 124   ;;  %v312_v12 = vand.u32 4, %v250_v46  ;;  %s731_s22 = smov 64  }
  0x17   :  { %215 = vmatpush1.bf16.msra.mxu1 %v676_v17  ;;  %v51_v32 = vrot.slane %v45_v30, %v50_v29  ;;  %v55_v33 = vrot.slane %v45_v30, %v54_v31  ;;  %v253_v50 = vand.u32 1, %v251_v47  ;;  %vm254_vm3 = vcmp.ne.s32.totalorder %v252_v49, 0 }
  0x18   :  { %216 = vmatprep.subr.bf16.mxu1 %v679_v18  ;;  %v283_v63 = vand.u32 2, %v251_v47  ;;  %vm284_vm7 = vcmp.ne.s32.totalorder %v282_v62, 0  ;;  %v313_v13 = vand.u32 4, %v251_v47  ;;  %vm323_vm9 = vcmask 31744   ;;  %v689_v47 = vld [vmem:[%s888_s4] sm:$0xff]  }
  0x19   :  { %vm255_vm4 = vcmp.ne.s32.totalorder %v253_v50, 0  ;;  %vm332_vm10 = vcmask 1014784   ;;  %vm314_vm11 = vcmp.ne.s32.totalorder %v312_v12, 0  ;;  %vm733_vm13 = vmmov 0  }
  0x1a   :  { %vm285_vm8 = vcmp.ne.s32.totalorder %v283_v63, 0  ;;  %vm315_vm12 = vcmp.ne.s32.totalorder %v313_v13, 0  ;;  %vm349_vm14 = vcmask 523264  }
  0x1b   :  { %217 = vmatpush1.bf16.msra.mxu1 %v682_v19 }
  0x1c   :  { %218 = vmatprep.subr.bf16.mxu1 %v683_v20 }
  0x1f   :  { %219 = vmatpush1.bf16.msra.mxu1 %v685_v21 }
  0x22   :  { %237 = vmatmul.mubr.bf16.vlgmr.msra.gmra.mxu1 %v123_v22 }
  0xcc   :  { %v116_v23 = vpop.f32.mrf.mxu0 }
  0xcd   :  { %v117_v35 = vadd.f32 %v116_v23, %v51_v32 }
  0xce   :  { %v118_v25 = vpop.f32.mrf.mxu0 }
  0xcf   :  { %v119_v41 = vadd.f32 %v118_v25, %v55_v33 }
  0xd0   :  { %v120_v26 = vpop.f32.mrf.mxu0 }
  0xd2   :  { %v121_v28 = vpop.f32.mrf.mxu0 }
  0xe2   :  { %v238_v34 = vpop.f32.mrf.mxu1 }
  0xe3   :  { %v840_v36 = vadd.f32 %v238_v34, %v51_v32 }
  0xe4   :  { %v240_v37 = vpop.f32.mrf.mxu1 }
  0xe5   :  { %v245_v38 = vmax.f32 %v840_v36, 0.0  ;;  %v843_v39 = vadd.f32 %v240_v37, %v55_v33  ;;  %v732_v37 = vmov 0.0  }
  0xe6   :  { %v242_v40 = vpop.f32.mrf.mxu1  ;;  %625 = vmatprep.subr.bf16.mxu0 %v732_v37  ;;  %633 = vmatprep.mubr.msk.bf16.mxu0 %vm733_vm13, %v732_v37 }
  0xe7   :  { %v246_v42 = vmax.f32 %v843_v39, 0.0  ;;  %v247_v43 = vmul.f32 %v245_v38, %v117_v35  ;;  %v686_v35 = vld [vmem:[%s888_s4 + $0x18] sm:$0xff]   ;;  %v687_v38 = vld [vmem:[%s888_s4 + $0x10] sm:$0xff]  }
  0xe8   :  { %v243_v44 = vpop.f32.mrf.mxu1  ;;  %626 = vmatpush3.bf16.msra.mxu0 %v686_v35 }
  0xe9   :  { %268 = vrot.lane.b32.xlu1 %v247_v43, %s725_s2  ;;  %v248_v45 = vmul.f32 %v246_v42, %v119_v41  ;;  %627 = vmatprep.subr.bf16.mxu0 %v732_v37 }
  0xeb   :  { %257 = vrot.lane.b32.xlu0 %v248_v45, %s726_s3 }
  0xec   :  { %628 = vmatpush3.bf16.msra.mxu0 %v687_v38 }
  0xed   :  { %270 = vrot.lane.b32.xlu1 %v248_v45, %s725_s2  ;;  %629 = vmatprep.subr.bf16.mxu0 %v732_v37 }
  0xef   :  { %261 = vrot.lane.b32.xlu0 %v247_v43, %s726_s3 }
 0x15b   :  { %v269_v48 = vpop.permute.xlu1 %268 }
 0x15d   :  { %v258_v51 = vpop.permute.xlu0 %257 }
 0x15f   :  { %v271_v52 = vpop.permute.xlu1 %270 }
 0x160   :  { %v273_v54 = vsel %vm272_vm1, %v269_v48, %v271_v52  ;;  %v277_v55 = vsel %vm272_vm1, %v271_v52, %v269_v48 }
 0x161   :  { %v262_v53 = vpop.permute.xlu0 %261 }
 0x162   :  { %v264_v56 = vsel %vm263_vm2, %v262_v53, %v258_v51  ;;  %v267_v57 = vsel %vm263_vm2, %v258_v51, %v262_v53  ;;  %v607_v53 = vld [vmem:[%s889_s5 + $0x1] ss:$0 sm:$0xff] }
 0x163   :  { %v278_v58 = vsel %vm254_vm3, %v267_v57, %v273_v54  ;;  %v279_v59 = vsel %vm255_vm4, %v264_v56, %v277_v55  ;;  %v454_v56 = vld [vmem:[%s884_s0] sm:$0xff] }
 0x164   :  { %v280_v60 = vadd.f32 %v278_v58, %v247_v43  ;;  %v281_v61 = vadd.f32 %v279_v59, %v248_v45  ;;  %v688_v45 = vld [vmem:[%s888_s4 + $0x8] sm:$0xff]  }
 0x165   :  { %630 = vmatpush3.bf16.msra.mxu0 %v688_v45 }
 0x166   :  { %291 = vrot.lane.b32.xlu1 %v280_v60, %s727_s18  ;;  %287 = vrot.lane.b32.xlu0 %v281_v61, %s727_s18 }
 0x167   :  { %631 = vmatprep.subr.bf16.mxu0 %v732_v37 }
 0x169   :  { %632 = vmatpush3.bf16.msra.mxu0 %v689_v47 }
 0x16a   :  { %300 = vrot.lane.b32.xlu1 %v281_v61, %s728_s19  ;;  %298 = vrot.lane.b32.xlu0 %v280_v60, %s728_s19 }
 0x16b   :  { %637 = vmatprep.subr.bf16.mxu0 %v732_v37 }
 0x1d8   :  { %v292_v0 = vpop.permute.xlu1 %291  ;;  %v288_v1 = vpop.permute.xlu0 %287 }
 0x1d9   :  { %v294_v4 = vsel %vm293_vm5, %v292_v0, %v288_v1  ;;  %v297_v5 = vsel %vm293_vm5, %v288_v1, %v292_v0 }
 0x1dc   :  { %v301_v2 = vpop.permute.xlu1 %300  ;;  %v299_v3 = vpop.permute.xlu0 %298 }
 0x1dd   :  { %v303_v6 = vsel %vm302_vm6, %v299_v3, %v301_v2  ;;  %v307_v7 = vsel %vm302_vm6, %v301_v2, %v299_v3 }
 0x1de   :  { %v308_v8 = vsel %vm284_vm7, %v297_v5, %v303_v6  ;;  %v309_v9 = vsel %vm285_vm8, %v294_v4, %v307_v7 }
 0x1df   :  { %v311_v10 = vadd.f32 %v309_v9, %v281_v61  ;;  %v310_v11 = vadd.f32 %v308_v8, %v280_v60  ;;  %v690_v8 = vld [vmem:[%s888_s4 + $0x28] sm:$0xff]   ;;  %v691_v9 = vld [vmem:[%s888_s4 + $0x20] sm:$0xff]   ;;  %s734_s4 = smov [#allocation2]  }
 0x1e1   :  { %317 = vrot.lane.b32.xlu0 %v311_v10, %s729_s20  ;;  %321 = vrot.lane.b32.xlu1 %v310_v11, %s729_s20 }
 0x1e5   :  { %328 = vrot.lane.b32.xlu0 %v310_v11, %s730_s21  ;;  %330 = vrot.lane.b32.xlu1 %v311_v10, %s730_s21 }
 0x253   :  { %v318_v14 = vpop.permute.xlu0 %317  ;;  %v322_v15 = vpop.permute.xlu1 %321 }
 0x254   :  { %v324_v18 = vsel %vm323_vm9, %v322_v15, %v318_v14  ;;  %v327_v19 = vsel %vm323_vm9, %v318_v14, %v322_v15 }
 0x257   :  { %v329_v16 = vpop.permute.xlu0 %328  ;;  %v331_v17 = vpop.permute.xlu1 %330 }
 0x258   :  { %v333_v20 = vsel %vm332_vm10, %v329_v16, %v331_v17  ;;  %v337_v21 = vsel %vm332_vm10, %v331_v17, %v329_v16  ;;  %v613_v16 = vld [vmem:[%s889_s5 + $0x2] ss:$0 sm:$0xff]  ;;  %s578_s5 = sshll.u32 %s734_s4, 4  ;;  %s579_s5 = int_to_ptr.vmem [resolvable:$true] %s578_s5 }
 0x259   :  { %v338_v22 = vsel %vm314_vm11, %v327_v19, %v333_v20  ;;  %v339_v23 = vsel %vm315_vm12, %v324_v18, %v337_v21  ;;  %s702_s15 = scalar_lea.vmem %s579_s5, 128  ;;  %p707_p1 = scmp.lt.s32.totalorder %s579_s5, %s579_s5 }
 0x25a   :  { %v340_v24 = vadd.f32 %v338_v22, %v310_v11  ;;  %v341_v25 = vadd.f32 %v339_v23, %v311_v10  ;;  %p703_p0 = scmp.ne.s32.totalorder %s579_s5, %s702_s15  ;;  %p708_p2 = scmp.lt.s32.totalorder %s702_s15, %s702_s15 }
 0x25c   :  { %v342_v26 = vmul.f32 0.35355338, %v340_v24  ;;  %v343_v27 = vmul.f32 0.35355338, %v341_v25  ;;  %p709_p3 = por %p708_p2, %p707_p1 }
 0x25e   :  { %v344_v28 = vmax.f32 %v342_v26, %v343_v27  ;;  %p710_p4 = pnand %p709_p3, %p703_p0 }
 0x260   :  { %346 = vrot.lane.b32.xlu0 %v344_v28, %s731_s22 }
 0x2d2   :  { %v347_v29 = vpop.permute.xlu0 %346 }
 0x2d3   :  { %v350_v30 = vmax.f32 %v344_v28, %v347_v29 }
 0x2d5   :  { %v351_v31 = vsub.f32 %v342_v26, %v350_v30  ;;  %v352_v32 = vsub.f32 %v343_v27, %v350_v30 }
 0x2d7   :  { %v353_v33 = vmul.f32 1.442695, %v351_v31  ;;  %v355_v34 = vmul.f32 1.442695, %v352_v32 }
 0x2d9   :  { %692 = vpow2.f32 %v353_v33 }
 0x2da   :  { %694 = vpow2.f32 %v355_v34 }
 0x2e6   :  { %v693_v40 = vpop.eup %692 }
 0x2e7   :  { %v695_v41 = vpop.eup %694  ;;  %v357_v42 = vmul.f32 %v693_v40, %v840_v36 }
 0x2e8   :  { %v365_v43 = vadd.f32 %v695_v41, %v693_v40  ;;  %v358_v44 = vmul.f32 %v695_v41, %v843_v39 }
 0x2ea   :  { %367 = vrot.lane.b32.xlu1 %v365_v43, %s731_s22  ;;  %v359_v46 = vadd.f32 %v358_v44, %v357_v42 }
 0x2ec   :  { %361 = vrot.lane.b32.xlu0 %v359_v46, %s731_s22 }
 0x35c   :  { %v368_v36 = vpop.permute.xlu1 %367 }
 0x35d   :  { %v370_v48 = vadd.f32 %v368_v36, %v365_v43 }
 0x35e   :  { %v362_v39 = vpop.permute.xlu0 %361 }
 0x35f   :  { %696 = vrcp.f32 %v370_v48  ;;  %v364_v49 = vadd.f32 %v362_v39, %v359_v46 }
 0x36c   :  { %v697_v50 = vpop.eup %696 }
 0x36d   :  { %v372_v51 = vmul.f32 %v697_v50, %v364_v49 }
 0x36f   :  { %v382_v52 = vpack.c.bf16 %v372_v51, %v372_v51 }
 0x371   :  { %634 = vmatmul.mubr.msk.bf16.vlgmr.msra.gmra.mxu0 %vm349_vm14, %v382_v52 }
 0x372   :  { %641 = vmatprep.mubr.msk.bf16.mxu0 %vm733_vm13, %v732_v37  ;;  %638 = vmatpush3.bf16.msra.mxu0 %v690_v8 }
 0x373   :  { %639 = vmatprep.subr.bf16.mxu0 %v732_v37 }
 0x376   :  { %640 = vmatpush3.bf16.msra.mxu0 %v691_v9 }
 0x431   :  { %v448_v54 = vpop.f32.mrf.mxu0 }
 0x432   :  { %v449_v55 = vadd.f32 %v607_v53, %v448_v54 }
 0x433   :  { %v635_v57 = vpop.f32.mrf.mxu0 }
 0x434   :  { %v455_v58 = vmax.f32 %v449_v55, 0.0 }
 0x435   :  { %v451_v59 = vpop.f32.mrf.mxu0 }
 0x436   :  { %v456_v60 = vadd.f32 %v455_v58, %v454_v56 }
 0x437   :  { %v636_v61 = vpop.f32.mrf.mxu0 }
 0x438   :  { %v458_v62 = vrot.slane %v456_v60, 4 }
 0x43a   :  { %v462_v63 = vadd.f32 %v458_v62, %v456_v60 }
 0x43c   :  { %v463_v0 = vsel %vm78_vm0, %v462_v63, 0.0 }
 0x43d   :  { %464 = vadd.xlane.f32.xlu1 %v463_v0 }
 0x4c6   :  { %v465_v1 = vpop.xlane.xlu1 %464 }
 0x4c7   :  { %v466_v2 = vmul.f32 0.015625, %v465_v1 }
 0x4c9   :  { %v467_v3 = vsub.f32 %v456_v60, %v466_v2 }
 0x4cb   :  { %v468_v4 = vmul.f32 %v467_v3, %v467_v3 }
 0x4cd   :  { %v470_v5 = vrot.slane %v468_v4, 4 }
 0x4cf   :  { %v473_v6 = vadd.f32 %v470_v5, %v468_v4 }
 0x4d1   :  { %v474_v7 = vsel %vm78_vm0, %v473_v6, 0.0 }
 0x4d2   :  { %475 = vadd.xlane.f32.xlu0 %v474_v7 }
 0x55b   :  { %v476_v10 = vpop.xlane.xlu0 %475 }
 0x55c   :  { %v477_v11 = vmul.f32 0.015625, %v476_v10 }
 0x55e   :  { %v478_v12 = vadd.f32 1e-05, %v477_v11 }
 0x560   :  { %698 = vrsqrt.f32 %v478_v12 }
 0x56d   :  { %v699_v13 = vpop.eup %698 }
 0x56e   :  { %v480_v14 = vmul.f32 %v699_v13, %v467_v3 }
 0x570   :  { %v486_v15 = vpack.c.bf16 %v480_v14, %v480_v14 }
 0x572   :  { %642 = vmatmul.mubr.msk.bf16.vlgmr.msra.gmra.mxu0 %vm78_vm0, %v486_v15 }
 0x632   :  { %v540_v17 = vpop.f32.mrf.mxu0 }
 0x633   :  { %v541_v18 = vadd.f32 %v613_v16, %v540_v17 }
 0x634   :  { %v643_v19 = vpop.f32.mrf.mxu0 }
 0x635   :  { %v546_v20 = vmax.f32 %v541_v18, 0.0 }
 0x636   :  { %v543_v21 = vpop.f32.mrf.mxu0 }
 0x637   :  { %v547_v22 = vadd.f32 %v546_v20, %v480_v14 }
 0x638   :  { %v644_v23 = vpop.f32.mrf.mxu0 }
 0x639   :  { %v549_v24 = vrot.slane %v547_v22, 4 }
 0x63b   :  { %v552_v25 = vadd.f32 %v549_v24, %v547_v22 }
 0x63d   :  { %v553_v26 = vsel %vm78_vm0, %v552_v25, 0.0 }
 0x63e   :  { %554 = vadd.xlane.f32.xlu0 %v553_v26 }
 0x6c7   :  { %v555_v27 = vpop.xlane.xlu0 %554 }
 0x6c8   :  { %v556_v28 = vmul.f32 0.015625, %v555_v27 }
 0x6ca   :  { %v557_v29 = vsub.f32 %v547_v22, %v556_v28 }
 0x6cc   :  { %v558_v30 = vmul.f32 %v557_v29, %v557_v29 }
 0x6ce   :  { %v560_v31 = vrot.slane %v558_v30, 4 }
 0x6d0   :  { %v563_v32 = vadd.f32 %v560_v31, %v558_v30 }
 0x6d2   :  { %v564_v33 = vsel %vm78_vm0, %v563_v32, 0.0 }
 0x6d3   :  { %565 = vadd.xlane.f32.xlu1 %v564_v33 }
 0x75c   :  { %v566_v34 = vpop.xlane.xlu1 %565 }
 0x75d   :  { %v567_v35 = vmul.f32 0.015625, %v566_v34 }
 0x75f   :  { %v568_v37 = vadd.f32 1e-05, %v567_v35 }
 0x761   :  { %700 = vrsqrt.f32 %v568_v37 }
 0x76e   :  { %v701_v38 = vpop.eup %700 }
 0x76f   :  { %v570_v40 = vmul.f32 %v701_v38, %v557_v29 }
 0x771   :  { %571 = vst.msk [vmem:[#allocation2] sm:$0xff] %vm78_vm0, %v570_v40 }
 0x772   :  { %713 = shalt.err (!%p710_p4)
}
 0x773   :  { %581 = dma.vmem_to_hbm [thread:$0]  %s579_s5, 128, %s890_s6, [#allocation3]  }
 0x774   :  { %722 = dma.done.wait [#allocation3], 128  }
 0x775   :  { %723 = vsyncadd [#allocation3], 4294967168 }
 0x776   :  { %585 = vsyncpa [#allocation3], 1 }

</bundles_post_ra>
